<compile_context>
chip_gen: v6e
topology: v6e:2x2x1
jax: 0.10.0
libtpu: 0.0.40
codegen_flags: <defaults>
</compile_context>

<pallas_src>
import functools

import jax
import jax.numpy as jnp
from jax.experimental import pallas as pl
from jax.experimental.pallas import tpu as pltpu

_LANES = 128
_SUBLANES = 8
_NEG_BIG = -1e30  # bias for padded action columns: exp(pad - max) underflows to 0


def _round_up(x, m):
    return ((x + m - 1) // m) * m


def actor_mlp_kernel(state_ref, w1_ref, b1_ref, w2_ref, b2_ref, w3_ref, b3_ref,
                     probs_ref):
    x = state_ref[...]                                       # [TB, input_dim] f32

    # fc1 + tanh  (tanh lowers to the EUP; matmuls hit the MXU with f32 accum)
    h1 = jnp.tanh(
        jnp.dot(x, w1_ref[...], preferred_element_type=jnp.float32) + b1_ref[...])
    # fc2 + tanh
    h2 = jnp.tanh(
        jnp.dot(h1, w2_ref[...], preferred_element_type=jnp.float32) + b2_ref[...])
    # fc3 -> logits over a full 128-lane row; padded action columns carry -1e30 bias.
    logits = (
        jnp.dot(h2, w3_ref[...], preferred_element_type=jnp.float32) + b3_ref[...])

    # Numerically stable softmax.  max() comes from real actions (padded logits
    # are ~-1e30) and exp(padded - max) == 0, so the denominator covers real
    # actions only -- bit-for-bit the same reduction set as torch Softmax(dim=-1).
    m = jnp.max(logits, axis=-1, keepdims=True)
    e = jnp.exp(logits - m)
    denom = jnp.sum(e, axis=-1, keepdims=True)
    # approx=False keeps exact parity with torch softmax; this kernel is
    # DMA/launch-overhead bound, so the EUP vrcp saving would be negligible.
    probs_ref[...] = (e * pl.reciprocal(denom, approx=False)).astype(probs_ref.dtype)


def prepare_params(params):
    """Pad the last layer to a lane-dense (128-wide) output once, outside jit.

    Returns (w1, b1, w2, b2, w3_padded, b3_padded, n_actions).
    """
    w1, b1, w2, b2, w3, b3 = params
    n_actions = w3.shape[1]
    n_pad = _round_up(n_actions, _LANES)
    w3p = jnp.pad(w3, ((0, 0), (0, n_pad - n_actions)))
    b3p = jnp.pad(b3, ((0, 0), (0, n_pad - n_actions)), constant_values=_NEG_BIG)
    return (w1, b1, w2, b2, w3p, b3p), n_actions


@functools.partial(jax.jit, static_argnames=("n_actions", "batch_tile"))
def _actor_forward_padded(state, padded_params, *, n_actions, batch_tile):
    w1, b1, w2, b2, w3p, b3p = padded_params
    B, input_dim = state.shape
    n_pad = w3p.shape[1]

    # Batch tile: multiple of 8 sublanes; TB<=1024 keeps double-buffered
    # state+probs blocks around ~1 MiB (safe on every generation incl. v7x).
    tb = min(batch_tile, _round_up(B, _SUBLANES))
    b_pad = _round_up(B, tb)
    if b_pad != B:
        state = jnp.pad(state, ((0, b_pad - B), (0, 0)))
    grid = (b_pad // tb,)

    def resident(shape):
        # Full-array block, same block index every grid step -> stays in VMEM.
        return pl.BlockSpec(shape, lambda i: (0, 0))

    probs_padded = pl.pallas_call(
        actor_mlp_kernel,
        out_shape=jax.ShapeDtypeStruct((b_pad, n_pad), jnp.float32),
        grid=grid,
        in_specs=[
            pl.BlockSpec((tb, input_dim), lambda i: (i, 0)),   # state: batch-tiled
            resident(w1.shape), resident(b1.shape),
            resident(w2.shape), resident(b2.shape),
            resident(w3p.shape), resident(b3p.shape),
        ],
        out_specs=pl.BlockSpec((tb, n_pad), lambda i: (i, 0)),
        compiler_params=pltpu.CompilerParams(
            dimension_semantics=("parallel",)),
    )(state, w1, b1, w2, b2, w3p, b3p)

    return probs_padded[:B, :n_actions]


def actor_forward(state, params, *, batch_tile=1024):
    """Fused actor MLP forward.

    state:  [B, input_dim] float32
    params: (w1, b1, w2, b2, w3, b3) with weights pre-transposed to (in, out)
            and biases shaped (1, out).
    Returns softmax probabilities [B, n_actions] (the Categorical's probs).
    """
    padded_params, n_actions = prepare_params(params)
    return _actor_forward_padded(state, padded_params,
                                 n_actions=n_actions, batch_tile=batch_tile)


def init_params(key, input_dim, fc1_dims, fc2_dims, n_actions):
    """Deterministic init mimicking nn.Linear's U(-1/sqrt(fan_in), 1/sqrt(fan_in)).

    Weights stored pre-transposed as (in, out); biases as (1, out) so they stay
    2-D (lane-major) inside the kernel.
    """
    def linear(k, fan_in, fan_out):
        kw, kb = jax.random.split(k)
        bound = 1.0 / jnp.sqrt(jnp.float32(fan_in))
        w = jax.random.uniform(kw, (fan_in, fan_out), jnp.float32, -bound, bound)
        b = jax.random.uniform(kb, (1, fan_out), jnp.float32, -bound, bound)
        return w, b

    k1, k2, k3 = jax.random.split(key, 3)
    w1, b1 = linear(k1, input_dim, fc1_dims)
    w2, b2 = linear(k2, fc1_dims, fc2_dims)
    w3, b3 = linear(k3, fc2_dims, n_actions)
    return (w1, b1, w2, b2, w3, b3)


def actor_forward_ref(state, params):
    """Plain-JAX reference for correctness checking."""
    w1, b1, w2, b2, w3, b3 = params
    h1 = jnp.tanh(state @ w1 + b1)
    h2 = jnp.tanh(h1 @ w2 + b2)
    logits = h2 @ w3 + b3
    return jax.nn.softmax(logits, axis=-1)


if __name__ == "__main__":
    # Small shapes consistent with the module: input_dims=(8,), fc1=fc2=32, n_actions=4.
    B = 8
    INPUT_DIM = 8
    FC1 = 32
    FC2 = 32
    N_ACTIONS = 4

    key = jax.random.PRNGKey(0)
    k_params, k_state, k_big = jax.random.split(key, 3)

    params = init_params(k_params, INPUT_DIM, FC1, FC2, N_ACTIONS)
    state = jax.random.normal(k_state, (B, INPUT_DIM), dtype=jnp.float32)

    probs = jax.block_until_ready(actor_forward(state, params))
    ref = actor_forward_ref(state, params)
    assert probs.shape == (B, N_ACTIONS)
    assert jnp.allclose(jnp.sum(probs, axis=-1), 1.0, atol=1e-5)
    assert jnp.allclose(probs, ref, atol=1e-5, rtol=1e-5)

    # Exercise the multi-step batch grid and the batch-padding path.
    B_BIG = 300
    state_big = jax.random.normal(k_big, (B_BIG, INPUT_DIM), dtype=jnp.float32)
    probs_big = jax.block_until_ready(
        actor_forward(state_big, params, batch_tile=128))
    ref_big = actor_forward_ref(state_big, params)
    assert probs_big.shape == (B_BIG, N_ACTIONS)
    assert jnp.allclose(jnp.sum(probs_big, axis=-1), 1.0, atol=1e-5)
    assert jnp.allclose(probs_big, ref_big, atol=1e-5, rtol=1e-5)

    # TODO(synk): torch.distributions.Categorical (and optimizer/checkpoint I/O)
    # has no Pallas equivalent; the kernel returns the distribution's probs tensor.
    print("KERNEL_OK")
</pallas_src>

<mosaic_0001>
module attributes {stable_mosaic.version = 11 : i64} {
  func.func @actor_mlp_kernel(%arg0: i32, %arg1: memref<8x8xf32, #tpu.memory_space<vmem>>, %arg2: memref<8x32xf32, #tpu.memory_space<vmem>>, %arg3: memref<1x32xf32, #tpu.memory_space<vmem>>, %arg4: memref<32x32xf32, #tpu.memory_space<vmem>>, %arg5: memref<1x32xf32, #tpu.memory_space<vmem>>, %arg6: memref<32x128xf32, #tpu.memory_space<vmem>>, %arg7: memref<1x128xf32, #tpu.memory_space<vmem>>, %arg8: memref<8x128xf32, #tpu.memory_space<vmem>>) attributes {dimension_semantics = [#tpu.dimension_semantics<parallel>], iteration_bounds = array<i64: 1>, scalar_prefetch = 0 : i64, scratch_operands = 0 : i64, tpu.core_type = #tpu.core_type<tc>, window_params = [{transform_indices = @transform_0, window_bounds = array<i64: 8, 8>}, {pipeline_mode = #tpu.pipeline_mode<synchronous>, transform_indices = @transform_1, window_bounds = array<i64: 8, 32>}, {pipeline_mode = #tpu.pipeline_mode<synchronous>, transform_indices = @transform_2, window_bounds = array<i64: 1, 32>}, {pipeline_mode = #tpu.pipeline_mode<synchronous>, transform_indices = @transform_3, window_bounds = array<i64: 32, 32>}, {pipeline_mode = #tpu.pipeline_mode<synchronous>, transform_indices = @transform_4, window_bounds = array<i64: 1, 32>}, {pipeline_mode = #tpu.pipeline_mode<synchronous>, transform_indices = @transform_5, window_bounds = array<i64: 32, 128>}, {pipeline_mode = #tpu.pipeline_mode<synchronous>, transform_indices = @transform_6, window_bounds = array<i64: 1, 128>}, {transform_indices = @transform_7, window_bounds = array<i64: 8, 128>}]} {
    %c0 = arith.constant 0 : index
    %c0_0 = arith.constant 0 : index
    %0 = vector.load %arg1[%c0, %c0_0] : memref<8x8xf32, #tpu.memory_space<vmem>>, vector<8x8xf32>
    %c0_1 = arith.constant 0 : index
    %c0_2 = arith.constant 0 : index
    %1 = vector.load %arg2[%c0_1, %c0_2] : memref<8x32xf32, #tpu.memory_space<vmem>>, vector<8x32xf32>
    %cst = arith.constant dense<0.000000e+00> : vector<8x32xf32>
    %2 = tpu.matmul %0, %1, %cst {dimension_numbers = #tpu.dot_dimension_numbers<[1], [0], [0], [1], [0, 0, 1, 1], [], []>} : vector<8x8xf32>, vector<8x32xf32>, vector<8x32xf32> -> vector<8x32xf32>
    %c0_3 = arith.constant 0 : index
    %c0_4 = arith.constant 0 : index
    %3 = vector.load %arg3[%c0_3, %c0_4] : memref<1x32xf32, #tpu.memory_space<vmem>>, vector<1x32xf32>
    %4 = vector.broadcast %3 : vector<1x32xf32> to vector<8x32xf32>
    %5 = arith.addf %2, %4 : vector<8x32xf32>
    %6 = math.tanh %5 : vector<8x32xf32>
    %c0_5 = arith.constant 0 : index
    %c0_6 = arith.constant 0 : index
    %7 = vector.load %arg4[%c0_5, %c0_6] : memref<32x32xf32, #tpu.memory_space<vmem>>, vector<32x32xf32>
    %cst_7 = arith.constant dense<0.000000e+00> : vector<8x32xf32>
    %8 = tpu.matmul %6, %7, %cst_7 {dimension_numbers = #tpu.dot_dimension_numbers<[1], [0], [0], [1], [0, 0, 1, 1], [], []>} : vector<8x32xf32>, vector<32x32xf32>, vector<8x32xf32> -> vector<8x32xf32>
    %c0_8 = arith.constant 0 : index
    %c0_9 = arith.constant 0 : index
    %9 = vector.load %arg5[%c0_8, %c0_9] : memref<1x32xf32, #tpu.memory_space<vmem>>, vector<1x32xf32>
    %10 = vector.broadcast %9 : vector<1x32xf32> to vector<8x32xf32>
    %11 = arith.addf %8, %10 : vector<8x32xf32>
    %12 = math.tanh %11 : vector<8x32xf32>
    %c0_10 = arith.constant 0 : index
    %c0_11 = arith.constant 0 : index
    %13 = vector.load %arg6[%c0_10, %c0_11] : memref<32x128xf32, #tpu.memory_space<vmem>>, vector<32x128xf32>
    %cst_12 = arith.constant dense<0.000000e+00> : vector<8x128xf32>
    %14 = tpu.matmul %12, %13, %cst_12 {dimension_numbers = #tpu.dot_dimension_numbers<[1], [0], [0], [1], [0, 0, 1, 1], [], []>} : vector<8x32xf32>, vector<32x128xf32>, vector<8x128xf32> -> vector<8x128xf32>
    %c0_13 = arith.constant 0 : index
    %c0_14 = arith.constant 0 : index
    %15 = vector.load %arg7[%c0_13, %c0_14] : memref<1x128xf32, #tpu.memory_space<vmem>>, vector<1x128xf32>
    %16 = vector.broadcast %15 : vector<1x128xf32> to vector<8x128xf32>
    %17 = arith.addf %14, %16 : vector<8x128xf32>
    %cst_15 = arith.constant dense<0xFF800000> : vector<8xf32>
    %18 = vector.multi_reduction <maximumf>, %17, %cst_15 [1] : vector<8x128xf32> to vector<8xf32>
    %19 = vector.shape_cast %18 : vector<8xf32> to vector<8x1xf32>
    %20 = vector.broadcast %19 : vector<8x1xf32> to vector<8x128xf32>
    %21 = arith.subf %17, %20 : vector<8x128xf32>
    %22 = math.exp %21 : vector<8x128xf32>
    %cst_16 = arith.constant dense<0.000000e+00> : vector<8xf32>
    %23 = vector.multi_reduction <add>, %22, %cst_16 [1] : vector<8x128xf32> to vector<8xf32>
    %24 = vector.shape_cast %23 : vector<8xf32> to vector<8x1xf32>
    %25 = tpu.reciprocal %24 : vector<8x1xf32> -> vector<8x1xf32>
    %26 = vector.broadcast %25 : vector<8x1xf32> to vector<8x128xf32>
    %27 = arith.mulf %22, %26 : vector<8x128xf32>
    %c0_17 = arith.constant 0 : index
    %c0_18 = arith.constant 0 : index
    %28 = vector.load %arg8[%c0_17, %c0_18] : memref<8x128xf32, #tpu.memory_space<vmem>>, vector<8x128xf32>
    tpu.vector_store %arg8[%c0_17, %c0_18], %27 {strides = array<i32>} : memref<8x128xf32, #tpu.memory_space<vmem>>, vector<8x128xf32>,
    return
  }
  func.func @transform_0(%arg0: i32) -> (i32, i32) {
    %c0_i32 = arith.constant 0 : i32
    %c0_i32_0 = arith.constant 0 : i32
    return %arg0, %c0_i32 : i32, i32
  }
  func.func @transform_1(%arg0: i32) -> (i32, i32) {
    %c0_i32 = arith.constant 0 : i32
    %c0_i32_0 = arith.constant 0 : i32
    %c0_i32_1 = arith.constant 0 : i32
    return %c0_i32, %c0_i32_0 : i32, i32
  }
  func.func @transform_2(%arg0: i32) -> (i32, i32) {
    %c0_i32 = arith.constant 0 : i32
    %c0_i32_0 = arith.constant 0 : i32
    %c0_i32_1 = arith.constant 0 : i32
    return %c0_i32, %c0_i32_0 : i32, i32
  }
  func.func @transform_3(%arg0: i32) -> (i32, i32) {
    %c0_i32 = arith.constant 0 : i32
    %c0_i32_0 = arith.constant 0 : i32
    %c0_i32_1 = arith.constant 0 : i32
    return %c0_i32, %c0_i32_0 : i32, i32
  }
  func.func @transform_4(%arg0: i32) -> (i32, i32) {
    %c0_i32 = arith.constant 0 : i32
    %c0_i32_0 = arith.constant 0 : i32
    %c0_i32_1 = arith.constant 0 : i32
    return %c0_i32, %c0_i32_0 : i32, i32
  }
  func.func @transform_5(%arg0: i32) -> (i32, i32) {
    %c0_i32 = arith.constant 0 : i32
    %c0_i32_0 = arith.constant 0 : i32
    %c0_i32_1 = arith.constant 0 : i32
    return %c0_i32, %c0_i32_0 : i32, i32
  }
  func.func @transform_6(%arg0: i32) -> (i32, i32) {
    %c0_i32 = arith.constant 0 : i32
    %c0_i32_0 = arith.constant 0 : i32
    %c0_i32_1 = arith.constant 0 : i32
    return %c0_i32, %c0_i32_0 : i32, i32
  }
  func.func @transform_7(%arg0: i32) -> (i32, i32) {
    %c0_i32 = arith.constant 0 : i32
    %c0_i32_0 = arith.constant 0 : i32
    return %arg0, %c0_i32 : i32, i32
  }
}

</mosaic_0001>

<bundles_post_ra>
// kernel: _actor_forward_padded.1
= control target key start
LH: loop header
LB: loop body
LE: loop exit
PB: predicated region body
PF: predicated region fallthrough
CT: control target
= control target key end

     0   :  { %12 = vsyncpa [#allocation3], 0  ;;  %s569_s0 = inlined_call_operand.hbm [shape: f32[8,8], index: 0, kind: input, shape index: {}]   ;;  %s570_s1 = inlined_call_operand.hbm [shape: f32[8,32], index: 1, kind: input, shape index: {}]   ;;  %s571_s2 = inlined_call_operand.vmem [shape: f32[1,32], index: 2, kind: input, shape index: {}]   ;;  %s572_s3 = inlined_call_operand.hbm [shape: f32[32,32], index: 3, kind: input, shape index: {}]   ;;  %s573_s4 = inlined_call_operand.vmem [shape: f32[1,32], index: 4, kind: input, shape index: {}]   ;;  %s574_s5 = inlined_call_operand.hbm [shape: f32[32,128], index: 5, kind: input, shape index: {}]   ;;  %s575_s6 = inlined_call_operand.vmem [shape: f32[1,128], index: 6, kind: input, shape index: {}]   ;;  %s576_s7 = inlined_call_operand.vmem [shape: f32[8,128], index: 7, kind: output, shape index: {}]  }
   0x1   :  { %13 = vsyncpa [#allocation5], 0 }
   0x2   :  { %14 = vsyncpa [#allocation8], 0  ;;  %s495_s24 = smov [#allocation4]   ;;  %s496_s26 = smov [#allocation2]  }
   0x3   :  { %s31_s25 = sshll.u32 %s495_s24, 4  ;;  %s21_s27 = sshll.u32 %s496_s26, 4  ;;  %s32_s25 = int_to_ptr.vmem [resolvable:$true] %s31_s25  ;;  %s22_s27 = int_to_ptr.vmem [resolvable:$true] %s21_s27 }
   0x4   :  { %s417_s28 = scalar_lea.vmem %s32_s25, 128  ;;  %p422_p1 = scmp.lt.s32.totalorder %s32_s25, %s32_s25 }
   0x5   :  { %p418_p0 = scmp.ne.s32.totalorder %s32_s25, %s417_s28  ;;  %p423_p2 = scmp.lt.s32.totalorder %s417_s28, %s417_s28 }
   0x7   :  { %p424_p3 = por %p423_p2, %p422_p1 }
   0x9   :  { %p425_p4 = pnand %p424_p3, %p418_p0 }
   0xb   :  { %428 = shalt.err (!%p425_p4)
}
   0xc   :  { %34 = dma.hbm_to_vmem [thread:$0]  %s570_s1, 128, %s32_s25, [#allocation5]  }
   0xd   :  { %s437_s8 = scalar_lea.vmem %s22_s27, 128  ;;  %p442_p6 = scmp.lt.s32.totalorder %s22_s27, %s22_s27 }
   0xe   :  { %p438_p5 = scmp.ne.s32.totalorder %s22_s27, %s437_s8  ;;  %p443_p7 = scmp.lt.s32.totalorder %s437_s8, %s437_s8 }
  0x10   :  { %p444_p8 = por %p443_p7, %p442_p6 }
  0x12   :  { %p445_p9 = pnand %p444_p8, %p438_p5 }
  0x14   :  { %448 = shalt.err (!%p445_p9)
}
  0x15   :  { %24 = dma.hbm_to_vmem [thread:$0]  %s569_s0, 128, %s22_s27, [#allocation3]  }
  0x16   :  { %s497_s11 = smov [#allocation6]  }
  0x17   :  { %s42_s12 = sshll.u32 %s497_s11, 4  ;;  %s43_s12 = int_to_ptr.vmem [resolvable:$true] %s42_s12 }
  0x18   :  { %s457_s13 = scalar_lea.vmem %s43_s12, 512  ;;  %p462_p11 = scmp.lt.s32.totalorder %s43_s12, %s43_s12 }
  0x19   :  { %p458_p10 = scmp.ne.s32.totalorder %s43_s12, %s457_s13  ;;  %p463_p12 = scmp.lt.s32.totalorder %s457_s13, %s457_s13 }
  0x1b   :  { %p464_p13 = por %p463_p12, %p462_p11 }
  0x1d   :  { %p465_p0 = pnand %p464_p13, %p458_p10 }
  0x1f   :  { %468 = shalt.err (!%p465_p0)
}
  0x20   :  { %s498_s1 = smov 128   ;;  %s499_s14 = smov 8  }
  0x21   :  { %48 = dma.hbm_to_vmem [thread:$0]  %s572_s3, 512, %s43_s12, [#allocation5], %s498_s1, %s498_s1, %s499_s14  }
  0x22   :  { %s500_s17 = smov [#allocation7]  }
  0x23   :  { %s56_s18 = sshll.u32 %s500_s17, 4  ;;  %s57_s18 = int_to_ptr.vmem [resolvable:$true] %s56_s18 }
  0x24   :  { %s477_s0 = scalar_lea.vmem %s57_s18, 512  ;;  %p482_p2 = scmp.lt.s32.totalorder %s57_s18, %s57_s18 }
  0x25   :  { %p478_p1 = scmp.ne.s32.totalorder %s57_s18, %s477_s0  ;;  %p483_p3 = scmp.lt.s32.totalorder %s477_s0, %s477_s0 }
  0x27   :  { %p484_p4 = por %p483_p3, %p482_p2 }
  0x29   :  { %p485_p5 = pnand %p484_p4, %p478_p1 }
  0x2b   :  { %488 = shalt.err (!%p485_p5)
}
  0x2c   :  { %62 = dma.hbm_to_vmem [thread:$0]  %s574_s5, 512, %s57_s18, [#allocation8], %s498_s1, %s498_s1, %s499_s14  }
  0x2d   :  { %489 = dma.done.wait [#allocation3], 128  }
  0x2e   :  { %490 = vsyncadd [#allocation3], 4294967168 }
  0x2f   :  { %491 = dma.done.wait [#allocation5], 640  }
  0x30   :  { %492 = vsyncadd [#allocation5], 4294966656 }
  0x31   :  { %493 = dma.done.wait [#allocation8], 512  }
  0x32   :  { %494 = vsyncadd [#allocation8], 4294966784  ;;  %v501_v0 = vmov 0.0   ;;  %vm502_vm0 = vmmov 0   ;;  %vm86_vm1 = vcmask 64512   ;;  %v78_v1 = vld [vmem:[#allocation4] sm:$0xff] }
  0x33   :  { %366 = vmatprep.subr.mxu0 %v501_v0  ;;  %368 = vmatprep.mubr.msk.f32.mxu0 %vm502_vm0, %v501_v0  ;;  %v77_v2 = vld [vmem:[#allocation2] sm:$0xff]  ;;  %v164_v3 = vld [vmem:[#allocation6 + $0x18] sm:$0xff]  ;;  %v162_v5 = vld [vmem:[#allocation6 + $0x8] sm:$0xff]  ;;  %vm172_vm2 = vcmask 261120  }
  0x34   :  { %371 = vmatprep.subr.mxu1 %v501_v0  ;;  %379 = vmatprep.mubr.msk.f32.mxu1 %vm502_vm0, %v501_v0  ;;  %v163_v4 = vld [vmem:[#allocation6 + $0x10] sm:$0xff]  ;;  %v161_v6 = vld [vmem:[#allocation6] sm:$0xff]  ;;  %v250_v12 = vld [vmem:[#allocation7 + $0x18] sm:$0xff] }
  0x35   :  { %367 = vmatpush3.msra.mxu0 %v78_v1  ;;  %372 = vmatpush3.msra.mxu1 %v164_v3  ;;  %v348_v7 = vld [vmem:[%s571_s2] ss:$0 sm:$0xff]  ;;  %v248_v14 = vld [vmem:[#allocation7 + $0x8] sm:$0xff]  ;;  %v247_v15 = vld [vmem:[#allocation7] sm:$0xff] }
  0x36   :  { %369 = vmatmul.mubr.msk.f32.vlgmr.msra.gmra.mxu0 %vm86_vm1, %v77_v2  ;;  %382 = vmatprep.subr.mxu0 %v501_v0  ;;  %v249_v13 = vld [vmem:[#allocation7 + $0x10] sm:$0xff] }
  0x37   :  { %390 = vmatprep.mubr.msk.f32.mxu0 %vm502_vm0, %v501_v0  ;;  %373 = vmatprep.subr.mxu1 %v501_v0  ;;  %v350_v16 = vld [vmem:[%s573_s4] ss:$0 sm:$0xff] }
  0x38   :  { %374 = vmatpush3.msra.mxu1 %v163_v4  ;;  %383 = vmatpush3.msra.mxu0 %v250_v12  ;;  %v352_v21 = vld [vmem:[%s575_s6] ss:$0 sm:$0xff] }
  0x39   :  { %375 = vmatprep.subr.mxu1 %v501_v0  ;;  %384 = vmatprep.subr.mxu0 %v501_v0 }
  0x3a   :  { %376 = vmatpush3.msra.mxu1 %v162_v5  ;;  %385 = vmatpush3.msra.mxu0 %v249_v13 }
  0x3b   :  { %377 = vmatprep.subr.mxu1 %v501_v0  ;;  %386 = vmatprep.subr.mxu0 %v501_v0 }
  0x3c   :  { %378 = vmatpush3.msra.mxu1 %v161_v6  ;;  %387 = vmatpush3.msra.mxu0 %v248_v14 }
  0x3d   :  { %388 = vmatprep.subr.mxu0 %v501_v0 }
  0x3e   :  { %389 = vmatpush3.msra.mxu0 %v247_v15 }
  0xf6   :  { %v156_v8 = vpop.f32.mrf.mxu0 }
  0xf7   :  { %v157_v9 = vadd.f32 %v348_v7, %v156_v8 }
  0xf8   :  { %v370_v10 = vpop.f32.mrf.mxu0 }
  0xf9   :  { %401 = vtanh.f32 %v157_v9 }
 0x106   :  { %v402_v11 = vpop.eup %401 }
 0x107   :  { %380 = vmatmul.mubr.msk.f32.vlgmr.msra.gmra.mxu1 %vm172_vm2, %v402_v11 }
 0x1c7   :  { %v242_v17 = vpop.f32.mrf.mxu1 }
 0x1c8   :  { %v243_v18 = vadd.f32 %v350_v16, %v242_v17 }
 0x1c9   :  { %v381_v19 = vpop.f32.mrf.mxu1 }
 0x1ca   :  { %403 = vtanh.f32 %v243_v18 }
 0x1d7   :  { %v404_v20 = vpop.eup %403 }
 0x1d8   :  { %391 = vmatmul.mubr.msk.f32.vlgmr.msra.gmra.mxu0 %vm172_vm2, %v404_v20 }
 0x298   :  { %v327_v22 = vpop.f32.mrf.mxu0 }
 0x299   :  { %v328_v23 = vadd.f32 %v352_v21, %v327_v22 }
 0x29a   :  { %v392_v24 = vpop.f32.mrf.mxu0 }
 0x29b   :  { %331 = vmax.xlane.f32.xlu0 %v328_v23 }
 0x324   :  { %v332_v25 = vpop.xlane.xlu0 %331 }
 0x325   :  { %v333_v26 = vsub.f32 %v328_v23, %v332_v25 }
 0x327   :  { %v334_v27 = vmul.f32 1.442695, %v333_v26 }
 0x329   :  { %405 = vpow2.f32 %v334_v27 }
 0x336   :  { %v406_v28 = vpop.eup %405 }
 0x337   :  { %336 = vadd.xlane.f32.xlu0 %v406_v28 }
 0x3c0   :  { %v337_v29 = vpop.xlane.xlu0 %336 }
 0x3c1   :  { %407 = vrcp.f32 %v337_v29 }
 0x3ce   :  { %v408_v30 = vpop.eup %407 }
 0x3cf   :  { %v339_v31 = vmul.f32 %v408_v30, %v406_v28 }
 0x3d1   :  { %340 = vst [vmem:[%s576_s7] sm:$0xff] %v339_v31 }
 0x3d2   :  { %345 = vsyncpa [#allocation3], 1 }
 0x3d3   :  { %346 = vsyncpa [#allocation5], 1 }
 0x3d4   :  { %347 = vsyncpa [#allocation8], 1 }

</bundles_post_ra>
